<compile_context>
chip_gen: v6e
topology: v6e:2x2x1
jax: 0.10.0
libtpu: 0.0.40
codegen_flags: <defaults>
</compile_context>

<pallas_src>
import jax
import jax.numpy as jnp
from jax.experimental import pallas as pl
from jax.experimental.pallas import tpu as pltpu

_LANE = 128      # lane width (pad layer-3 output to this)
_SUB = 16        # bf16 sublane packing -> keep batch tiles a multiple of 16


def _generator_kernel(x_ref, w1_ref, b1_ref, w2_ref, b2_ref, w3_ref, b3_ref,
                      o_ref):
    # Layer 1: Linear (bf16 MXU, f32 accum) + bias + ReLU (f32), back to bf16.
    h1 = jnp.dot(x_ref[...], w1_ref[...],
                 preferred_element_type=jnp.float32) + b1_ref[...]
    h1 = jnp.maximum(h1, 0.0).astype(jnp.bfloat16)
    # Layer 2: Linear + ReLU.
    h2 = jnp.dot(h1, w2_ref[...],
                 preferred_element_type=jnp.float32) + b2_ref[...]
    h2 = jnp.maximum(h2, 0.0).astype(jnp.bfloat16)
    # Layer 3 (lane-padded to 128 cols): Linear + ScaledTanh(6.0).
    h3 = jnp.dot(h2, w3_ref[...],
                 preferred_element_type=jnp.float32) + b3_ref[...]
    o_ref[...] = (6.0 * jnp.tanh(h3)).astype(o_ref.dtype)


def generator_forward(x, params, *, tm=512):
    """Fused MLP forward. x: (B, z_dim) f32. params: dict of f32 W/b arrays.

    Weights are stored as (in_dim, out_dim) (transposed vs. torch) so each
    layer is h = x @ W + b.
    """
    w1, b1 = params["w1"], params["b1"]
    w2, b2 = params["w2"], params["b2"]
    w3, b3 = params["w3"], params["b3"]
    B, z_dim = x.shape
    hid2 = w2.shape[1]
    out_dim = w3.shape[1]

    # --- Lane-dense layer 3: zero-pad W3/b3 to a multiple of 128 lanes. ---
    out_pad = pl.cdiv(out_dim, _LANE) * _LANE
    w3p = jnp.zeros((hid2, out_pad), jnp.float32).at[:, :out_dim].set(w3)
    b3p = jnp.zeros((1, out_pad), jnp.float32).at[:, :out_dim].set(b3)

    # --- bf16 MXU inputs; biases stay f32 (added to the f32 accumulators). ---
    x_bf = x.astype(jnp.bfloat16)
    w1b = w1.astype(jnp.bfloat16)
    w2b = w2.astype(jnp.bfloat16)
    w3b = w3p.astype(jnp.bfloat16)

    # --- Batch tiling: pick a tile (multiple of 16), pad B up to it. ---
    b_rounded = pl.cdiv(B, _SUB) * _SUB
    tm_eff = min(tm, b_rounded)
    tm_eff = pl.cdiv(tm_eff, _SUB) * _SUB
    b_padded = pl.cdiv(B, tm_eff) * tm_eff
    if b_padded != B:
        x_bf = jnp.pad(x_bf, ((0, b_padded - B), (0, 0)))
    grid = (b_padded // tm_eff,)

    # Weights/biases: constant index_map -> loaded once, resident in VMEM.
    resident = lambda a: pl.BlockSpec(a.shape, lambda i: (0, 0))

    out = pl.pallas_call(
        _generator_kernel,
        out_shape=jax.ShapeDtypeStruct((b_padded, out_pad), jnp.float32),
        grid=grid,
        in_specs=[
            pl.BlockSpec((tm_eff, z_dim), lambda i: (i, 0)),   # x tile
            resident(w1b), resident(b1),
            resident(w2b), resident(b2),
            resident(w3b), resident(b3p),
        ],
        out_specs=pl.BlockSpec((tm_eff, out_pad), lambda i: (i, 0)),
        compiler_params=pltpu.CompilerParams(
            dimension_semantics=("parallel",),
            vmem_limit_bytes=48 << 20,
        ),
    )(x_bf, w1b, b1, w2b, b2, w3b, b3p)

    # Strip batch padding and the lane padding of the last layer.
    return out[:B, :out_dim]


def init_generator_params(key, z_dim, layers_dim=(128, 128, 2)):
    """Deterministic init mirroring the PyTorch module's shapes.

    Weights ~ N(0, 0.02) as in FeedForwardSequential.initialization();
    biases use PyTorch's default Linear bias init U(-1/sqrt(fan_in), +).
    Weights are stored as (in_dim, out_dim) (transposed vs. torch)."""
    dims = [z_dim, *layers_dim]
    params = {}
    for i in range(len(dims) - 1):
        key, kw, kb = jax.random.split(key, 3)
        fan_in, fan_out = dims[i], dims[i + 1]
        params[f"w{i + 1}"] = 0.02 * jax.random.normal(
            kw, (fan_in, fan_out), dtype=jnp.float32)
        bound = 1.0 / (fan_in ** 0.5)
        params[f"b{i + 1}"] = jax.random.uniform(
            kb, (1, fan_out), dtype=jnp.float32, minval=-bound, maxval=bound)
    return params


def _reference_forward(x, params):
    h = jnp.maximum(x @ params["w1"] + params["b1"], 0.0)
    h = jnp.maximum(h @ params["w2"] + params["b2"], 0.0)
    return 6.0 * jnp.tanh(h @ params["w3"] + params["b3"])


if __name__ == "__main__":
    key = jax.random.PRNGKey(0)
    z_dim = 16
    batch = 8

    kx, kp = jax.random.split(key)
    x = jax.random.normal(kx, (batch, z_dim), dtype=jnp.float32)
    params = init_generator_params(kp, z_dim, layers_dim=(128, 128, 2))

    out = generator_forward(x, params)
    out = jax.block_until_ready(out)

    ref = _reference_forward(x, params)
    assert out.shape == (batch, 2), out.shape
    # bf16 MXU inputs -> looser tolerance vs. the f32 reference.
    assert jnp.allclose(out, ref, atol=2e-2, rtol=2e-2), "mismatch vs reference"

    print("KERNEL_OK")
</pallas_src>

<mosaic_0001>
module attributes {stable_mosaic.version = 11 : i64} {
  func.func @_generator_kernel(%arg0: i32, %arg1: memref<16x16xbf16, #tpu.memory_space<vmem>>, %arg2: memref<16x128xbf16, #tpu.memory_space<vmem>>, %arg3: memref<1x128xf32, #tpu.memory_space<vmem>>, %arg4: memref<128x128xbf16, #tpu.memory_space<vmem>>, %arg5: memref<1x128xf32, #tpu.memory_space<vmem>>, %arg6: memref<128x128xbf16, #tpu.memory_space<vmem>>, %arg7: memref<1x128xf32, #tpu.memory_space<vmem>>, %arg8: memref<16x128xf32, #tpu.memory_space<vmem>>) attributes {dimension_semantics = [#tpu.dimension_semantics<parallel>], iteration_bounds = array<i64: 1>, scalar_prefetch = 0 : i64, scratch_operands = 0 : i64, tpu.core_type = #tpu.core_type<tc>, window_params = [{transform_indices = @transform_0, window_bounds = array<i64: 16, 16>}, {pipeline_mode = #tpu.pipeline_mode<synchronous>, transform_indices = @transform_1, window_bounds = array<i64: 16, 128>}, {pipeline_mode = #tpu.pipeline_mode<synchronous>, transform_indices = @transform_2, window_bounds = array<i64: 1, 128>}, {pipeline_mode = #tpu.pipeline_mode<synchronous>, transform_indices = @transform_3, window_bounds = array<i64: 128, 128>}, {pipeline_mode = #tpu.pipeline_mode<synchronous>, transform_indices = @transform_4, window_bounds = array<i64: 1, 128>}, {pipeline_mode = #tpu.pipeline_mode<synchronous>, transform_indices = @transform_5, window_bounds = array<i64: 128, 128>}, {pipeline_mode = #tpu.pipeline_mode<synchronous>, transform_indices = @transform_6, window_bounds = array<i64: 1, 128>}, {transform_indices = @transform_7, window_bounds = array<i64: 16, 128>}]} {
    %c0 = arith.constant 0 : index
    %c0_0 = arith.constant 0 : index
    %0 = vector.load %arg1[%c0, %c0_0] : memref<16x16xbf16, #tpu.memory_space<vmem>>, vector<16x16xbf16>
    %c0_1 = arith.constant 0 : index
    %c0_2 = arith.constant 0 : index
    %1 = vector.load %arg2[%c0_1, %c0_2] : memref<16x128xbf16, #tpu.memory_space<vmem>>, vector<16x128xbf16>
    %cst = arith.constant dense<0.000000e+00> : vector<16x128xf32>
    %2 = tpu.matmul %0, %1, %cst {dimension_numbers = #tpu.dot_dimension_numbers<[1], [0], [0], [1], [0, 0, 1, 1], [], []>} : vector<16x16xbf16>, vector<16x128xbf16>, vector<16x128xf32> -> vector<16x128xf32>
    %c0_3 = arith.constant 0 : index
    %c0_4 = arith.constant 0 : index
    %3 = vector.load %arg3[%c0_3, %c0_4] : memref<1x128xf32, #tpu.memory_space<vmem>>, vector<1x128xf32>
    %4 = vector.broadcast %3 : vector<1x128xf32> to vector<16x128xf32>
    %5 = arith.addf %2, %4 : vector<16x128xf32>
    %cst_5 = arith.constant 0.000000e+00 : f32
    %6 = vector.broadcast %cst_5 : f32 to vector<16x128xf32>
    %7 = arith.maximumf %5, %6 : vector<16x128xf32>
    %8 = arith.truncf %7 : vector<16x128xf32> to vector<16x128xbf16>
    %c0_6 = arith.constant 0 : index
    %c0_7 = arith.constant 0 : index
    %9 = vector.load %arg4[%c0_6, %c0_7] : memref<128x128xbf16, #tpu.memory_space<vmem>>, vector<128x128xbf16>
    %cst_8 = arith.constant dense<0.000000e+00> : vector<16x128xf32>
    %10 = tpu.matmul %8, %9, %cst_8 {dimension_numbers = #tpu.dot_dimension_numbers<[1], [0], [0], [1], [0, 0, 1, 1], [], []>} : vector<16x128xbf16>, vector<128x128xbf16>, vector<16x128xf32> -> vector<16x128xf32>
    %c0_9 = arith.constant 0 : index
    %c0_10 = arith.constant 0 : index
    %11 = vector.load %arg5[%c0_9, %c0_10] : memref<1x128xf32, #tpu.memory_space<vmem>>, vector<1x128xf32>
    %12 = vector.broadcast %11 : vector<1x128xf32> to vector<16x128xf32>
    %13 = arith.addf %10, %12 : vector<16x128xf32>
    %cst_11 = arith.constant 0.000000e+00 : f32
    %14 = vector.broadcast %cst_11 : f32 to vector<16x128xf32>
    %15 = arith.maximumf %13, %14 : vector<16x128xf32>
    %16 = arith.truncf %15 : vector<16x128xf32> to vector<16x128xbf16>
    %c0_12 = arith.constant 0 : index
    %c0_13 = arith.constant 0 : index
    %17 = vector.load %arg6[%c0_12, %c0_13] : memref<128x128xbf16, #tpu.memory_space<vmem>>, vector<128x128xbf16>
    %cst_14 = arith.constant dense<0.000000e+00> : vector<16x128xf32>
    %18 = tpu.matmul %16, %17, %cst_14 {dimension_numbers = #tpu.dot_dimension_numbers<[1], [0], [0], [1], [0, 0, 1, 1], [], []>} : vector<16x128xbf16>, vector<128x128xbf16>, vector<16x128xf32> -> vector<16x128xf32>
    %c0_15 = arith.constant 0 : index
    %c0_16 = arith.constant 0 : index
    %19 = vector.load %arg7[%c0_15, %c0_16] : memref<1x128xf32, #tpu.memory_space<vmem>>, vector<1x128xf32>
    %20 = vector.broadcast %19 : vector<1x128xf32> to vector<16x128xf32>
    %21 = arith.addf %18, %20 : vector<16x128xf32>
    %22 = math.tanh %21 : vector<16x128xf32>
    %cst_17 = arith.constant 6.000000e+00 : f32
    %23 = vector.broadcast %cst_17 : f32 to vector<16x128xf32>
    %24 = arith.mulf %23, %22 : vector<16x128xf32>
    %c0_18 = arith.constant 0 : index
    %c0_19 = arith.constant 0 : index
    %25 = vector.load %arg8[%c0_18, %c0_19] : memref<16x128xf32, #tpu.memory_space<vmem>>, vector<16x128xf32>
    tpu.vector_store %arg8[%c0_18, %c0_19], %24 {strides = array<i32>} : memref<16x128xf32, #tpu.memory_space<vmem>>, vector<16x128xf32>,
    return
  }
  func.func @transform_0(%arg0: i32) -> (i32, i32) {
    %c0_i32 = arith.constant 0 : i32
    %c0_i32_0 = arith.constant 0 : i32
    return %arg0, %c0_i32 : i32, i32
  }
  func.func @transform_1(%arg0: i32) -> (i32, i32) {
    %c0_i32 = arith.constant 0 : i32
    %c0_i32_0 = arith.constant 0 : i32
    %c0_i32_1 = arith.constant 0 : i32
    return %c0_i32, %c0_i32_0 : i32, i32
  }
  func.func @transform_2(%arg0: i32) -> (i32, i32) {
    %c0_i32 = arith.constant 0 : i32
    %c0_i32_0 = arith.constant 0 : i32
    %c0_i32_1 = arith.constant 0 : i32
    return %c0_i32, %c0_i32_0 : i32, i32
  }
  func.func @transform_3(%arg0: i32) -> (i32, i32) {
    %c0_i32 = arith.constant 0 : i32
    %c0_i32_0 = arith.constant 0 : i32
    %c0_i32_1 = arith.constant 0 : i32
    return %c0_i32, %c0_i32_0 : i32, i32
  }
  func.func @transform_4(%arg0: i32) -> (i32, i32) {
    %c0_i32 = arith.constant 0 : i32
    %c0_i32_0 = arith.constant 0 : i32
    %c0_i32_1 = arith.constant 0 : i32
    return %c0_i32, %c0_i32_0 : i32, i32
  }
  func.func @transform_5(%arg0: i32) -> (i32, i32) {
    %c0_i32 = arith.constant 0 : i32
    %c0_i32_0 = arith.constant 0 : i32
    %c0_i32_1 = arith.constant 0 : i32
    return %c0_i32, %c0_i32_0 : i32, i32
  }
  func.func @transform_6(%arg0: i32) -> (i32, i32) {
    %c0_i32 = arith.constant 0 : i32
    %c0_i32_0 = arith.constant 0 : i32
    %c0_i32_1 = arith.constant 0 : i32
    return %c0_i32, %c0_i32_0 : i32, i32
  }
  func.func @transform_7(%arg0: i32) -> (i32, i32) {
    %c0_i32 = arith.constant 0 : i32
    %c0_i32_0 = arith.constant 0 : i32
    return %arg0, %c0_i32 : i32, i32
  }
}

</mosaic_0001>

<bundles_post_ra>
// kernel: tpu_custom_call.1
= control target key start
LH: loop header
LB: loop body
LE: loop exit
PB: predicated region body
PF: predicated region fallthrough
CT: control target
= control target key end

     0   :  { %12 = vsyncpa [#allocation3], 0  ;;  %s741_s0 = inlined_call_operand.hbm [shape: bf16[16,16], index: 0, kind: input, shape index: {}]   ;;  %s742_s1 = inlined_call_operand.hbm [shape: bf16[16,128], index: 1, kind: input, shape index: {}]   ;;  %s743_s2 = inlined_call_operand.vmem [shape: f32[1,128], index: 2, kind: input, shape index: {}]   ;;  %s744_s3 = inlined_call_operand.hbm [shape: bf16[128,128], index: 3, kind: input, shape index: {}]   ;;  %s745_s4 = inlined_call_operand.vmem [shape: f32[1,128], index: 4, kind: input, shape index: {}]   ;;  %s746_s5 = inlined_call_operand.hbm [shape: bf16[128,128], index: 5, kind: input, shape index: {}]   ;;  %s747_s6 = inlined_call_operand.vmem [shape: f32[1,128], index: 6, kind: input, shape index: {}]   ;;  %s748_s7 = inlined_call_operand.hbm [shape: f32[16,128], index: 7, kind: output, shape index: {}]  }
   0x1   :  { %13 = vsyncpa [#allocation6], 0 }
   0x2   :  { %14 = vsyncpa [#allocation9], 0 }
   0x3   :  { %15 = vsyncpa [#allocation4], 0  ;;  %s634_s24 = smov [#allocation5]   ;;  %s635_s26 = smov [#allocation2]  }
   0x4   :  { %s33_s25 = sshll.u32 %s634_s24, 4  ;;  %s21_s27 = sshll.u32 %s635_s26, 4  ;;  %s34_s25 = int_to_ptr.vmem [resolvable:$true] %s33_s25  ;;  %s22_s27 = int_to_ptr.vmem [resolvable:$true] %s21_s27 }
   0x5   :  { %s534_s28 = scalar_lea.vmem %s34_s25, 128  ;;  %p539_p1 = scmp.lt.s32.totalorder %s34_s25, %s34_s25 }
   0x6   :  { %p535_p0 = scmp.ne.s32.totalorder %s34_s25, %s534_s28  ;;  %p540_p2 = scmp.lt.s32.totalorder %s534_s28, %s534_s28 }
   0x8   :  { %p541_p3 = por %p540_p2, %p539_p1 }
   0xa   :  { %p542_p4 = pnand %p541_p3, %p535_p0 }
   0xc   :  { %545 = shalt.err (!%p542_p4)
}
   0xd   :  { %s636_s29 = smov 64   ;;  %s637_s30 = smov 4  }
   0xe   :  { %39 = dma.hbm_to_vmem [thread:$0]  %s742_s1, 128, %s34_s25, [#allocation6], %s636_s29, %s636_s29, %s637_s30  }
   0xf   :  { %s554_s10 = scalar_lea.vmem %s22_s27, 128  ;;  %p559_p6 = scmp.lt.s32.totalorder %s22_s27, %s22_s27 }
  0x10   :  { %p555_p5 = scmp.ne.s32.totalorder %s22_s27, %s554_s10  ;;  %p560_p7 = scmp.lt.s32.totalorder %s554_s10, %s554_s10 }
  0x12   :  { %p561_p8 = por %p560_p7, %p559_p6 }
  0x14   :  { %p562_p9 = pnand %p561_p8, %p555_p5 }
  0x16   :  { %565 = shalt.err (!%p562_p9)
}
  0x17   :  { %27 = dma.hbm_to_vmem [thread:$0]  %s741_s0, 128, %s22_s27, [#allocation3], %s636_s29, %s636_s29, %s637_s30  }
  0x18   :  { %s638_s13 = smov [#allocation7]   ;;  %s639_s15 = smov [#allocation8]  }
  0x19   :  { %s47_s14 = sshll.u32 %s638_s13, 4  ;;  %s61_s16 = sshll.u32 %s639_s15, 4  ;;  %s48_s14 = int_to_ptr.vmem [resolvable:$true] %s47_s14  ;;  %s62_s16 = int_to_ptr.vmem [resolvable:$true] %s61_s16 }
  0x1a   :  { %s574_s1 = scalar_lea.vmem %s48_s14, 1024  ;;  %p579_p11 = scmp.lt.s32.totalorder %s48_s14, %s48_s14 }
  0x1b   :  { %p575_p10 = scmp.ne.s32.totalorder %s48_s14, %s574_s1  ;;  %p580_p12 = scmp.lt.s32.totalorder %s574_s1, %s574_s1 }
  0x1d   :  { %p581_p13 = por %p580_p12, %p579_p11 }
  0x1f   :  { %p582_p0 = pnand %p581_p13, %p575_p10 }
  0x21   :  { %585 = shalt.err (!%p582_p0)
}
  0x22   :  { %53 = dma.hbm_to_vmem [thread:$0]  %s744_s3, 1024, %s48_s14, [#allocation6], %s636_s29, %s636_s29, %s637_s30  }
  0x23   :  { %s594_s0 = scalar_lea.vmem %s62_s16, 1024  ;;  %p599_p2 = scmp.lt.s32.totalorder %s62_s16, %s62_s16 }
  0x24   :  { %p595_p1 = scmp.ne.s32.totalorder %s62_s16, %s594_s0  ;;  %p600_p3 = scmp.lt.s32.totalorder %s594_s0, %s594_s0 }
  0x26   :  { %p601_p4 = por %p600_p3, %p599_p2 }
  0x28   :  { %p602_p5 = pnand %p601_p4, %p595_p1 }
  0x2a   :  { %605 = shalt.err (!%p602_p5)
}
  0x2b   :  { %67 = dma.hbm_to_vmem [thread:$0]  %s746_s5, 1024, %s62_s16, [#allocation9], %s636_s29, %s636_s29, %s637_s30  }
  0x2c   :  { %626 = dma.done.wait [#allocation3], 128  }
  0x2d   :  { %627 = vsyncadd [#allocation3], 4294967168 }
  0x2e   :  { %628 = dma.done.wait [#allocation6], 1152  }
  0x2f   :  { %629 = vsyncadd [#allocation6], 4294966144 }
  0x30   :  { %630 = dma.done.wait [#allocation9], 1024  }
  0x31   :  { %631 = vsyncadd [#allocation9], 4294966272  ;;  %v640_v0 = vmov 0.0   ;;  %vm641_vm0 = vmmov 0   ;;  %v504_v1 = vld [vmem:[#allocation5] sm:$0xff]   ;;  %v505_v2 = vld [vmem:[#allocation2] sm:$0xff]  }
  0x32   :  { %447 = vmatprep.subr.bf16.mxu0 %v640_v0  ;;  %449 = vmatprep.mubr.msk.bf16.mxu0 %vm641_vm0, %v640_v0  ;;  %vm105_vm1 = vcmask 130048   ;;  %v506_v3 = vld [vmem:[#allocation7 + $0x38] sm:$0xff]   ;;  %v507_v4 = vld [vmem:[#allocation7 + $0x30] sm:$0xff]   ;;  %v508_v5 = vld [vmem:[#allocation7 + $0x28] sm:$0xff]  }
  0x33   :  { %453 = vmatprep.subr.bf16.mxu1 %v640_v0  ;;  %469 = vmatprep.mubr.msk.bf16.mxu1 %vm641_vm0, %v640_v0  ;;  %v509_v6 = vld [vmem:[#allocation7 + $0x20] sm:$0xff]   ;;  %v510_v7 = vld [vmem:[#allocation7 + $0x18] sm:$0xff]   ;;  %v511_v8 = vld [vmem:[#allocation7 + $0x10] sm:$0xff]  }
  0x34   :  { %448 = vmatpush3.bf16.msra.mxu0 %v504_v1  ;;  %454 = vmatpush3.bf16.msra.mxu1 %v506_v3  ;;  %v512_v9 = vld [vmem:[#allocation7 + $0x8] sm:$0xff]   ;;  %v513_v10 = vld [vmem:[#allocation7] sm:$0xff]   ;;  %v514_v11 = vld [vmem:[#allocation8 + $0x38] sm:$0xff]  }
  0x35   :  { %473 = vmatprep.subr.bf16.mxu0 %v640_v0  ;;  %455 = vmatprep.subr.bf16.mxu1 %v640_v0  ;;  %v515_v12 = vld [vmem:[#allocation8 + $0x30] sm:$0xff]   ;;  %v516_v13 = vld [vmem:[#allocation8 + $0x28] sm:$0xff]   ;;  %v517_v14 = vld [vmem:[#allocation8 + $0x20] sm:$0xff]  }
  0x36   :  { %v518_v15 = vld [vmem:[#allocation8 + $0x18] sm:$0xff]   ;;  %v405_v16 = vld [vmem:[%s743_s2] ss:$0 sm:$0xff]  ;;  %v520_v27 = vld [vmem:[#allocation8 + $0x8] sm:$0xff]  }
  0x37   :  { %450 = vmatmul.mubr.msk.bf16.vlgmr.msra.gmra.mxu0 %vm105_vm1, %v505_v2  ;;  %v519_v26 = vld [vmem:[#allocation8 + $0x10] sm:$0xff]   ;;  %v521_v28 = vld [vmem:[#allocation8] sm:$0xff]  }
  0x38   :  { %489 = vmatprep.mubr.msk.bf16.mxu0 %vm641_vm0, %v640_v0  ;;  %456 = vmatpush3.bf16.msra.mxu1 %v507_v4  ;;  %v409_v29 = vld [vmem:[%s745_s4] ss:$0 sm:$0xff]  ;;  %s642_s4 = smov [#allocation10]  }
  0x39   :  { %457 = vmatprep.subr.bf16.mxu1 %v640_v0  ;;  %474 = vmatpush3.bf16.msra.mxu0 %v514_v11  ;;  %v418_v39 = vld [vmem:[%s747_s6] ss:$0 sm:$0xff]  ;;  %s391_s24 = sshll.u32 %s642_s4, 4  ;;  %s392_s24 = int_to_ptr.vmem [resolvable:$true] %s391_s24 }
  0x3a   :  { %475 = vmatprep.subr.bf16.mxu0 %v640_v0  ;;  %s606_s25 = scalar_lea.vmem %s392_s24, 256  ;;  %p611_p7 = scmp.lt.s32.totalorder %s392_s24, %s392_s24 }
  0x3b   :  { %p607_p6 = scmp.ne.s32.totalorder %s392_s24, %s606_s25  ;;  %p612_p8 = scmp.lt.s32.totalorder %s606_s25, %s606_s25 }
  0x3c   :  { %458 = vmatpush3.bf16.msra.mxu1 %v508_v5 }
  0x3d   :  { %459 = vmatprep.subr.bf16.mxu1 %v640_v0  ;;  %476 = vmatpush3.bf16.msra.mxu0 %v515_v12  ;;  %p613_p9 = por %p612_p8, %p611_p7 }
  0x3e   :  { %477 = vmatprep.subr.bf16.mxu0 %v640_v0 }
  0x3f   :  { %p614_p10 = pnand %p613_p9, %p607_p6 }
  0x40   :  { %460 = vmatpush3.bf16.msra.mxu1 %v509_v6 }
  0x41   :  { %461 = vmatprep.subr.bf16.mxu1 %v640_v0  ;;  %478 = vmatpush3.bf16.msra.mxu0 %v516_v13 }
  0x42   :  { %479 = vmatprep.subr.bf16.mxu0 %v640_v0 }
  0x44   :  { %462 = vmatpush3.bf16.msra.mxu1 %v510_v7 }
  0x45   :  { %463 = vmatprep.subr.bf16.mxu1 %v640_v0  ;;  %480 = vmatpush3.bf16.msra.mxu0 %v517_v14 }
  0x46   :  { %481 = vmatprep.subr.bf16.mxu0 %v640_v0 }
  0x48   :  { %464 = vmatpush3.bf16.msra.mxu1 %v511_v8 }
  0x49   :  { %465 = vmatprep.subr.bf16.mxu1 %v640_v0  ;;  %482 = vmatpush3.bf16.msra.mxu0 %v518_v15 }
  0x4a   :  { %483 = vmatprep.subr.bf16.mxu0 %v640_v0 }
  0x4c   :  { %466 = vmatpush3.bf16.msra.mxu1 %v512_v9 }
  0x4d   :  { %467 = vmatprep.subr.bf16.mxu1 %v640_v0  ;;  %484 = vmatpush3.bf16.msra.mxu0 %v519_v26 }
  0x4e   :  { %485 = vmatprep.subr.bf16.mxu0 %v640_v0 }
  0x50   :  { %468 = vmatpush3.bf16.msra.mxu1 %v513_v10 }
  0x51   :  { %486 = vmatpush3.bf16.msra.mxu0 %v520_v27 }
  0x52   :  { %487 = vmatprep.subr.bf16.mxu0 %v640_v0 }
  0x55   :  { %488 = vmatpush3.bf16.msra.mxu0 %v521_v28 }
  0xf7   :  { %v143_v17 = vpop.f32.mrf.mxu0 }
  0xf8   :  { %v144_v19 = vadd.f32 %v405_v16, %v143_v17 }
  0xf9   :  { %v451_v18 = vpop.f32.mrf.mxu0 }
  0xfa   :  { %v150_v23 = vmax.f32 %v144_v19, 0.0 }
  0xfb   :  { %v146_v20 = vpop.f32.mrf.mxu0 }
  0xfc   :  { %v147_v21 = vadd.f32 %v405_v16, %v146_v20 }
  0xfd   :  { %v452_v22 = vpop.f32.mrf.mxu0 }
  0xfe   :  { %v151_v24 = vmax.f32 %v147_v21, 0.0 }
 0x100   :  { %v152_v25 = vpack.c.bf16 %v151_v24, %v150_v23 }
 0x102   :  { %470 = vmatmul.mubr.bf16.vlgmr.msra.gmra.mxu1 %v152_v25 }
 0x1c2   :  { %v258_v30 = vpop.f32.mrf.mxu1 }
 0x1c3   :  { %v259_v32 = vadd.f32 %v409_v29, %v258_v30 }
 0x1c4   :  { %v471_v31 = vpop.f32.mrf.mxu1 }
 0x1c5   :  { %v265_v36 = vmax.f32 %v259_v32, 0.0 }
 0x1c6   :  { %v261_v33 = vpop.f32.mrf.mxu1 }
 0x1c7   :  { %v262_v34 = vadd.f32 %v409_v29, %v261_v33 }
 0x1c8   :  { %v472_v35 = vpop.f32.mrf.mxu1 }
 0x1c9   :  { %v266_v37 = vmax.f32 %v262_v34, 0.0 }
 0x1cb   :  { %v267_v38 = vpack.c.bf16 %v266_v37, %v265_v36 }
 0x1cd   :  { %490 = vmatmul.mubr.bf16.vlgmr.msra.gmra.mxu0 %v267_v38 }
 0x28d   :  { %v373_v40 = vpop.f32.mrf.mxu0 }
 0x28e   :  { %v374_v41 = vadd.f32 %v418_v39, %v373_v40 }
 0x28f   :  { %v491_v42 = vpop.f32.mrf.mxu0 }
 0x290   :  { %522 = vtanh.f32 %v374_v41 }
 0x291   :  { %v376_v43 = vpop.f32.mrf.mxu0 }
 0x292   :  { %v377_v44 = vadd.f32 %v418_v39, %v376_v43 }
 0x293   :  { %v492_v45 = vpop.f32.mrf.mxu0 }
 0x294   :  { %524 = vtanh.f32 %v377_v44 }
 0x29d   :  { %v523_v46 = vpop.eup %522 }
 0x29e   :  { %v382_v47 = vmul.f32 6.0, %v523_v46 }
 0x2a0   :  { %384 = vst [vmem:[#allocation10] sm:$0xff] %v382_v47 }
 0x2a1   :  { %v525_v48 = vpop.eup %524 }
 0x2a2   :  { %v383_v49 = vmul.f32 6.0, %v525_v48 }
 0x2a4   :  { %385 = vst [vmem:[#allocation10 + $0x8] sm:$0xff] %v383_v49 }
 0x2a5   :  { %617 = shalt.err (!%p614_p10)
}
 0x2a6   :  { %s643_s6 = smov 128   ;;  %s644_s26 = smov 8  }
 0x2a7   :  { %397 = dma.vmem_to_hbm [thread:$0]  %s392_s24, 256, %s748_s7, [#allocation4], %s643_s6, %s643_s6, %s644_s26  }
 0x2a8   :  { %632 = dma.done.wait [#allocation4], 256  }
 0x2a9   :  { %633 = vsyncadd [#allocation4], 4294967040 }
 0x2aa   :  { %401 = vsyncpa [#allocation3], 1 }
 0x2ab   :  { %402 = vsyncpa [#allocation6], 1 }
 0x2ac   :  { %403 = vsyncpa [#allocation9], 1 }
 0x2ad   :  { %404 = vsyncpa [#allocation4], 1 }

</bundles_post_ra>
